<compile_context>
chip_gen: v5e
topology: v5e:2x2
jax: 0.10.0
libtpu: 0.0.40
codegen_flags: <defaults>
</compile_context>

<pallas_src>
import functools

import numpy as np
import jax
import jax.numpy as jnp
from jax.experimental import pallas as pl
from jax.experimental.pallas import tpu as pltpu


def bn_pad_kernel(sb_ref, x_ref, o_ref, *, pad):
    """One (channel-tile, batch) block per grid step.

    sb_ref: (2, CB, 1, Wp)  row 0 = folded BN scale, row 1 = folded BN shift,
                            both pre-broadcast along the padded width Wp.
                            BN(0) == shift, so row 1 doubles as the border fill.
    x_ref:  (1, CB, H, W)
    o_ref:  (1, CB, Hp, Wp) with Hp = H + 2*pad, Wp = W + 2*pad
    """
    h, w = x_ref.shape[2], x_ref.shape[3]
    cb, hp, wp = o_ref.shape[1], o_ref.shape[2], o_ref.shape[3]

    sb = sb_ref[...].astype(jnp.float32)            # (2, CB, 1, Wp)
    scale = sb[0, :, :, :w]                         # (CB, 1, W)
    shift = sb[1, :, :, :w]                         # (CB, 1, W)

    x = x_ref[0].astype(jnp.float32)                # (CB, H, W)
    y = (x * scale + shift).astype(o_ref.dtype)     # folded BN: one FMA / element

    if pad > 0:
        # Fill the whole padded block with the pad value (constant along H, so
        # this is a sublane broadcast), then overwrite the interior.
        fill = jnp.broadcast_to(sb[1], (cb, hp, wp)).astype(o_ref.dtype)
        o_ref[0] = fill
        o_ref[0, :, pl.ds(pad, h), pl.ds(pad, w)] = y
    else:
        o_ref[0] = y


def _round_up(v, m):
    return -(-v // m) * m


def _pick_c_block(C, H, W, Hp, Wp, x_itemsize, o_itemsize,
                  budget_bytes=6 * 1024 * 1024):
    """Largest divisor of C whose double-buffered (in + out) blocks fit `budget`.

    Uses the real VMEM footprint: the trailing two block dims are padded to
    (sublane=8, lane=128) tiles, which dominates when W << 128.
    """
    def tiled_bytes(cb):
        xb = cb * _round_up(H, 8) * _round_up(W, 128) * x_itemsize
        ob = cb * _round_up(Hp, 8) * _round_up(Wp, 128) * o_itemsize
        return 2 * (xb + ob)                        # x2: double-buffered pipeline

    best = 1
    for cb in range(1, C + 1):
        if C % cb == 0 and tiled_bytes(cb) <= budget_bytes:
            best = cb
    return best, tiled_bytes(best)


def bn_and_pad_forward(x, weight, bias, running_mean, running_var, *,
                       eps=1e-5, pad_pixels=1):
    """Inference BNAndPadLayer: BatchNorm2d (running stats) + value-padded border."""
    N, C, H, W = x.shape
    p = int(pad_pixels)
    Hp, Wp = H + 2 * p, W + 2 * p

    inv = 1.0 / jnp.sqrt(running_var.astype(jnp.float32) + eps)
    scale = inv if weight is None else weight.astype(jnp.float32) * inv
    mean_scaled = running_mean.astype(jnp.float32) * scale
    shift = -mean_scaled if bias is None else bias.astype(jnp.float32) - mean_scaled
    # BN applied to a zero input == shift, which is exactly the PyTorch pad value.

    # Per-channel coefficients, pre-broadcast along the padded width so every
    # in-kernel broadcast is a plain sublane broadcast.
    sb = jnp.stack(
        [jnp.broadcast_to(scale[:, None, None], (C, 1, Wp)),
         jnp.broadcast_to(shift[:, None, None], (C, 1, Wp))], axis=0)  # (2, C, 1, Wp)

    itemsize = jnp.dtype(x.dtype).itemsize
    CB, block_bytes = _pick_c_block(C, H, W, Hp, Wp, itemsize, itemsize)
    grid = (C // CB, N)   # channel tiles outer -> sb block reused across batch
    kernel = functools.partial(bn_pad_kernel, pad=p)

    # Only raise the scoped-VMEM limit if even the CB=1 block needs it
    # (never triggers at small shapes; leaves defaults untouched otherwise).
    vmem_needed = 4 * block_bytes   # generous headroom for in-kernel temporaries
    vmem_limit = (int(min(vmem_needed, 48 * 1024 * 1024))
                  if vmem_needed > 16 * 1024 * 1024 else None)

    return pl.pallas_call(
        kernel,
        out_shape=jax.ShapeDtypeStruct((N, C, Hp, Wp), x.dtype),
        grid=grid,
        in_specs=[
            pl.BlockSpec((2, CB, 1, Wp), lambda c, n: (0, c, 0, 0)),
            pl.BlockSpec((1, CB, H, W), lambda c, n: (n, c, 0, 0)),
        ],
        out_specs=pl.BlockSpec((1, CB, Hp, Wp), lambda c, n: (n, c, 0, 0)),
        compiler_params=pltpu.CompilerParams(
            dimension_semantics=("parallel", "parallel"),
            vmem_limit_bytes=vmem_limit),
    )(sb, x)


# ---------------------------------------------------------------------------
# Pure-JAX reference (mirrors the PyTorch module, BN in eval mode).
# ---------------------------------------------------------------------------
def bn_and_pad_reference(x, weight, bias, mean, var, eps, pad_pixels):
    inv = 1.0 / jnp.sqrt(var + eps)
    y = (x - mean[None, :, None, None]) * inv[None, :, None, None]
    if weight is not None:
        y = y * weight[None, :, None, None]
    if bias is not None:
        y = y + bias[None, :, None, None]
    if pad_pixels > 0:
        if weight is not None:
            pad_vals = bias - mean * weight * inv
        else:
            pad_vals = -mean * inv
        p = pad_pixels
        y = jnp.pad(y, ((0, 0), (0, 0), (p, p), (p, p)))
        pvb = pad_vals[None, :, None, None]
        y = y.at[:, :, :p, :].set(pvb)
        y = y.at[:, :, -p:, :].set(pvb)
        y = y.at[:, :, :, :p].set(pvb)
        y = y.at[:, :, :, -p:].set(pvb)
    return y


if __name__ == "__main__":
    key = jax.random.PRNGKey(0)
    kx, kw, kb, km, kv = jax.random.split(key, 5)

    N, C, H, W = 2, 4, 16, 16
    pad_pixels = 1
    eps = 1e-5

    x = jax.random.normal(kx, (N, C, H, W), jnp.float32)
    weight = 1.0 + 0.1 * jax.random.normal(kw, (C,), jnp.float32)
    bias = 0.1 * jax.random.normal(kb, (C,), jnp.float32)
    running_mean = 0.1 * jax.random.normal(km, (C,), jnp.float32)
    running_var = 0.5 + jax.nn.softplus(jax.random.normal(kv, (C,), jnp.float32))

    fwd = jax.jit(functools.partial(bn_and_pad_forward,
                                    eps=eps, pad_pixels=pad_pixels))
    out = fwd(x, weight, bias, running_mean, running_var)
    out = jax.block_until_ready(out)

    ref = bn_and_pad_reference(x, weight, bias, running_mean, running_var,
                               eps, pad_pixels)
    np.testing.assert_allclose(np.asarray(out), np.asarray(ref),
                               rtol=1e-4, atol=1e-4)
    print("KERNEL_OK")
</pallas_src>

<mosaic_0001>
module attributes {stable_mosaic.version = 11 : i64} {
  func.func @bn_pad_kernel(%arg0: i32, %arg1: i32, %arg2: memref<2x4x1x18xf32, #tpu.memory_space<vmem>>, %arg3: memref<1x4x16x16xf32, #tpu.memory_space<vmem>>, %arg4: memref<1x4x18x18xf32, #tpu.memory_space<vmem>>) attributes {dimension_semantics = [#tpu.dimension_semantics<parallel>, #tpu.dimension_semantics<parallel>], iteration_bounds = array<i64: 1, 2>, scalar_prefetch = 0 : i64, scratch_operands = 0 : i64, tpu.core_type = #tpu.core_type<tc>, window_params = [{transform_indices = @transform_0, window_bounds = array<i64: 2, 4, 1, 18>}, {transform_indices = @transform_1, window_bounds = array<i64: 1, 4, 16, 16>}, {transform_indices = @transform_2, window_bounds = array<i64: 1, 4, 18, 18>}]} {
    %c0 = arith.constant 0 : index
    %c0_0 = arith.constant 0 : index
    %c0_1 = arith.constant 0 : index
    %c0_2 = arith.constant 0 : index
    %0 = vector.load %arg2[%c0, %c0_0, %c0_1, %c0_2] : memref<2x4x1x18xf32, #tpu.memory_space<vmem>>, vector<2x4x1x18xf32>
    %1 = vector.extract_strided_slice %0 {offsets = [0, 0, 0, 0], sizes = [1, 4, 1, 16], strides = [1, 1, 1, 1]} : vector<2x4x1x18xf32> to vector<1x4x1x16xf32>
    %2 = vector.shape_cast %1 : vector<1x4x1x16xf32> to vector<4x1x16xf32>
    %3 = vector.extract_strided_slice %0 {offsets = [1, 0, 0, 0], sizes = [1, 4, 1, 16], strides = [1, 1, 1, 1]} : vector<2x4x1x18xf32> to vector<1x4x1x16xf32>
    %4 = vector.shape_cast %3 : vector<1x4x1x16xf32> to vector<4x1x16xf32>
    %c0_3 = arith.constant 0 : index
    %c0_4 = arith.constant 0 : index
    %c0_5 = arith.constant 0 : index
    %c0_6 = arith.constant 0 : index
    %5 = vector.load %arg3[%c0_3, %c0_4, %c0_5, %c0_6] : memref<1x4x16x16xf32, #tpu.memory_space<vmem>>, vector<1x4x16x16xf32>
    %6 = vector.shape_cast %5 : vector<1x4x16x16xf32> to vector<4x16x16xf32>
    %7 = vector.broadcast %2 : vector<4x1x16xf32> to vector<4x16x16xf32>
    %8 = arith.mulf %6, %7 : vector<4x16x16xf32>
    %9 = vector.broadcast %4 : vector<4x1x16xf32> to vector<4x16x16xf32>
    %10 = arith.addf %8, %9 : vector<4x16x16xf32>
    %11 = vector.extract_strided_slice %0 {offsets = [1, 0, 0, 0], sizes = [1, 4, 1, 18], strides = [1, 1, 1, 1]} : vector<2x4x1x18xf32> to vector<1x4x1x18xf32>
    %12 = vector.shape_cast %11 : vector<1x4x1x18xf32> to vector<4x1x18xf32>
    %13 = vector.shape_cast %12 : vector<4x1x18xf32> to vector<4x1x18xf32>
    %14 = vector.broadcast %13 : vector<4x1x18xf32> to vector<4x18x18xf32>
    %c0_7 = arith.constant 0 : index
    %c0_8 = arith.constant 0 : index
    %c0_9 = arith.constant 0 : index
    %c0_10 = arith.constant 0 : index
    %15 = vector.load %arg4[%c0_7, %c0_8, %c0_9, %c0_10] : memref<1x4x18x18xf32, #tpu.memory_space<vmem>>, vector<1x4x18x18xf32>
    %16 = vector.shape_cast %15 : vector<1x4x18x18xf32> to vector<4x18x18xf32>
    %17 = vector.shape_cast %14 : vector<4x18x18xf32> to vector<1x4x18x18xf32>
    tpu.vector_store %arg4[%c0_7, %c0_8, %c0_9, %c0_10], %17 {strides = array<i32>} : memref<1x4x18x18xf32, #tpu.memory_space<vmem>>, vector<1x4x18x18xf32>,
    %c0_11 = arith.constant 0 : index
    %c0_12 = arith.constant 0 : index
    %c1 = arith.constant 1 : index
    %c1_13 = arith.constant 1 : index
    %18 = vector.load %arg4[%c0_11, %c0_12, %c1, %c1_13] : memref<1x4x18x18xf32, #tpu.memory_space<vmem>>, vector<1x4x16x16xf32>
    %19 = vector.shape_cast %18 : vector<1x4x16x16xf32> to vector<4x16x16xf32>
    %20 = vector.shape_cast %10 : vector<4x16x16xf32> to vector<1x4x16x16xf32>
    tpu.vector_store %arg4[%c0_11, %c0_12, %c1, %c1_13], %20 {strides = array<i32>} : memref<1x4x18x18xf32, #tpu.memory_space<vmem>>, vector<1x4x16x16xf32>,
    return
  }
  func.func @transform_0(%arg0: i32, %arg1: i32) -> (i32, i32, i32, i32) {
    %c0_i32 = arith.constant 0 : i32
    %c0_i32_0 = arith.constant 0 : i32
    %c0_i32_1 = arith.constant 0 : i32
    %c0_i32_2 = arith.constant 0 : i32
    return %c0_i32, %arg0, %c0_i32_0, %c0_i32_1 : i32, i32, i32, i32
  }
  func.func @transform_1(%arg0: i32, %arg1: i32) -> (i32, i32, i32, i32) {
    %c0_i32 = arith.constant 0 : i32
    %c0_i32_0 = arith.constant 0 : i32
    %c0_i32_1 = arith.constant 0 : i32
    return %arg1, %arg0, %c0_i32, %c0_i32_0 : i32, i32, i32, i32
  }
  func.func @transform_2(%arg0: i32, %arg1: i32) -> (i32, i32, i32, i32) {
    %c0_i32 = arith.constant 0 : i32
    %c0_i32_0 = arith.constant 0 : i32
    %c0_i32_1 = arith.constant 0 : i32
    return %arg1, %arg0, %c0_i32, %c0_i32_0 : i32, i32, i32, i32
  }
}

</mosaic_0001>

<bundles_post_ra>
// kernel: bn_and_pad_forward.1
= control target key start
LH: loop header
LB: loop body
LE: loop exit
PB: predicated region body
PF: predicated region fallthrough
CT: control target
= control target key end

     0   :  { %7 = vsyncpa [#allocation3], 0  ;;  %s781_s0 = inlined_call_operand.vmem [shape: f32[2,4,1,18], index: 0, kind: input, shape index: {}]   ;;  %s782_s1 = inlined_call_operand.hbm [shape: f32[2,4,16,16], index: 1, kind: input, shape index: {}]   ;;  %s783_s2 = inlined_call_operand.vmem [shape: f32[2,4,18,18], index: 2, kind: output, shape index: {}]  }
   0x1   :  { %9 = vsyncpa [#allocation3 + $0x1], 0  ;;  %s621_s9 = smov 0   ;;  %s623_s10 = smov 0  }
   0x2   :  { %s625_s11 = smov 0   ;;  %s627_s12 = smov 0  }
   0x3   :  { %s629_s13 = smov 0   ;;  %s631_s14 = smov 0  }
   0x4 LB: > { %s440_s15 = sadd.s32 4294967295, %s601_s14   ;;  %s24_s16 = sadd.s32 1, %s597_s13  ;;  %s601_s14 = sphi %s631_s14, %s15_s14   ;;  %s597_s13 = sphi %s629_s13, %s790_s13   ;;  %s593_s12 = sphi %s627_s12, %s789_s12   ;;  %s589_s11 = sphi %s625_s11, %s788_s11   ;;  %s585_s10 = sphi %s623_s10, %s787_s10   ;;  %s581_s9 = sphi %s621_s9, %s786_s9  }
   0x5   : > { %p25_p0 = scmp.ge.s32.totalorder %s24_s16, 2  ;;  %s62_s17 = sadd.s32 1, %s589_s11 }
   0x6   : > { %p69_p1 = scmp.ne.s32.totalorder %s589_s11, %s585_s10  ;;  %p70_p2 = scmp.eq.s32.totalorder %s601_s14, 0 }
   0x7   : > { %s792_s16 = smov (%p25_p0, %s24_s16), 0  ;;  %p75_p4 = scmp.ne.s32.totalorder %s585_s10, %s581_s9 }
   0x8   : > { %p657_p3 = por %p70_p2, %p69_p1  ;;  %s57_s19 = ssub.s32 %s597_s13, %s792_s16 }
   0x9   : > { %p76_p5 = scmp.eq.s32.totalorder %s440_s15, 0  ;;  %p60_p6 = scmp.eq.s32.totalorder %s57_s19, 0 }
   0xa   : > { %p461_p8 = scmp.lt.s32.totalorder %s601_s14, 2  ;;  %s135_s22 = sand.u32 1, %s589_s11  }
   0xb   : > { %p664_p7 = por %p76_p5, %p75_p4  ;;  %s453_s23 = sshll.u32 %s597_s13, 6 }
   0xc   : > { %s670_s21 = scalar_select %p60_p6, %s589_s11, %s62_s17  }
   0xd   : > { %s445_s24 = sshll.u32 %s135_s22, 6  ;;  %s147_s27 = scalar_lea.hbm %s782_s1, %s453_s23 }
   0xe   : > { %s148_s28 = sshll.u32 %s147_s27, 4  ;;  %s139_s29 = scalar_lea.vmem [#allocation2], %s445_s24  ;;  %s149_s28 = int_to_ptr.hbm [resolvable:$true] %s148_s28 }
   0xf   : > { %s150_s30 = sshll.u32 %s139_s29, 4  ;;  %p458_p9 = pnand %p461_p8, %p657_p3  ;;  %s151_s30 = int_to_ptr.vmem [resolvable:$true] %s150_s30 }
  0x10   : > { %p448_p10 = scmp.ge.s32.totalorder %s601_s14, 1  ;;  %p158_p11 = scmp.lt.s32.totalorder %s601_s14, 3 }
  0x11   : > { %s136_s3 = scalar_lea.sflag [#allocation3], %s135_s22  ;;  %s603_s4 = smov 128  }
  0x12   : > { %s604_s5 = smov 8   ;;  %p159_p12 = pnand %p448_p10, %p158_p11 }
  0x13   : > { %460 = dma.hbm_to_vmem [thread:$0]  (!%p458_p9), %s149_s28, 1024, %s151_s30, %s136_s3, %s603_s4, %s603_s4, %s604_s5  }
  0x14   : > { %162 = sbr.rel (%p159_p12) target bundleno = 165 (0xa5), region = 28  ;;  %s164_s6 = sand.u32 (!%p159_p12), 1, %s585_s10  }
  0x15   : > { %s449_s7 = sshll.u32 (!%p159_p12), %s164_s6, 6  ;;  %s165_s8 = scalar_lea.sflag (!%p159_p12), [#allocation3], %s164_s6 }
  0x16   : > { %s682_s9 = scalar_lea.vmem (!%p159_p12), [#allocation2], %s449_s7 }
  0x19   : > { %576 = dma.done.wait (%p664_p7), %s165_s8, 1024  }
  0x1a   : > { %578 = vsyncadd (%p664_p7), %s165_s8, 4294966272  ;;  %p206_p13 = scmp.lt.s32.totalorder %s593_s12, 1  ;;  %v226_v0 = vld [vmem:[%s682_s9 + $0x10] sm:$0xff]  ;;  %vm272_vm0 = vcmask 146432   ;;  %v513_v1 = vld [vmem:[%s781_s0 + $0x1] ss:$0 sm:$0xff] }
  0x1b   : > { %v514_v2 = vld [vmem:[%s781_s0 + $0x5] ss:$0 sm:$0xff]  ;;  %v515_v4 = vld [vmem:[%s781_s0] ss:$0 sm:$0xff]  ;;  %v246_v5 = vmul.f32 %v513_v1, %v226_v0  ;;  %v516_v6 = vld [vmem:[%s781_s0 + $0x4] ss:$0 sm:$0xff] }
  0x1c   : > { %s794_s12 = smov (!%p206_p13, %s593_s12), 1  ;;  %v224_v3 = vld [vmem:[%s682_s9] sm:$0xff]  ;;  %v227_v8 = vld [vmem:[%s682_s9 + $0x18] sm:$0xff]  ;;  %v225_v10 = vld [vmem:[%s682_s9 + $0x8] sm:$0xff]  ;;  %s605_s30 = smov 1   ;;  %vm275_vm1 = vcmask 140288  }
  0x1d   : > { %s454_s15 = smul.u32 96, %s794_s12  ;;  %v244_v7 = vmul.f32 %v515_v4, %v224_v3  ;;  %v266_v9 = vadd.f32 %v514_v2, %v246_v5  ;;  %v518_v11 = vld [vmem:[%s781_s0 + $0x7] ss:$0 sm:$0xff]  ;;  %v247_v14 = vmul.f32 %v513_v1, %v227_v8  ;;  %v519_v15 = vld [vmem:[%s781_s0 + $0x2] ss:$0 sm:$0xff]  ;;  %v245_v17 = vmul.f32 %v515_v4, %v225_v10  ;;  %v229_v19 = vld [vmem:[%s682_s9 + $0x28] sm:$0xff] }
  0x1e   : > { %v228_v13 = vld [vmem:[%s682_s9 + $0x20] sm:$0xff]  ;;  %v231_v24 = vld [vmem:[%s682_s9 + $0x38] sm:$0xff]  ;;  %v230_v25 = vld [vmem:[%s682_s9 + $0x30] sm:$0xff]  ;;  %v249_v26 = vmul.f32 %v519_v15, %v229_v19  ;;  %vm318_vm2 = vcmask 138248  }
  0x1f   : > { %s694_s19 = scalar_lea.vmem %s783_s2, %s454_s15  ;;  %v264_v12 = vadd.f32 %v516_v6, %v244_v7  ;;  %298 = vrot.lane.b32.xlu1 %v266_v9, %s605_s30  ;;  %v520_v16 = vld [vmem:[%s781_s0 + $0x6] ss:$0 sm:$0xff]  ;;  %v248_v18 = vmul.f32 %v519_v15, %v228_v13  ;;  %v267_v20 = vadd.f32 %v514_v2, %v247_v14  ;;  %v517_v21 = vld [vmem:[%s781_s0 + $0x3] ss:$0 sm:$0xff]  ;;  %v265_v23 = vadd.f32 %v516_v6, %v245_v17 }
  0x20   : > { %277 = vst.msk [vmem:[%s694_s19 + $0x18] sm:$0xff] %vm272_vm0, %v514_v2  ;;  %v251_v27 = vmul.f32 %v517_v21, %v231_v24  ;;  %v250_v28 = vmul.f32 %v517_v21, %v230_v25  ;;  %v269_v29 = vadd.f32 %v520_v16, %v249_v26 }
  0x21   : > { %278 = vst.msk [vmem:[%s694_s19 + $0x20] sm:$0xff] %vm272_vm0, %v514_v2  ;;  %294 = vrot.lane.b32.xlu0 %v264_v12, %s605_s30  ;;  %v268_v22 = vadd.f32 %v520_v16, %v248_v18 }
  0x22   : > { %273 = vst.msk [vmem:[%s694_s19] sm:$0xff] %vm272_vm0, %v516_v6  ;;  %v271_v30 = vadd.f32 %v518_v11, %v251_v27  ;;  %v270_v31 = vadd.f32 %v518_v11, %v250_v28 }
  0x23   : > { %274 = vst.msk [vmem:[%s694_s19 + $0x8] sm:$0xff] %vm272_vm0, %v516_v6  ;;  %302 = vrot.lane.b32.xlu2 %v268_v22, %s605_s30 }
  0x24   : > { %283 = vst.msk [vmem:[%s694_s19 + $0x48] sm:$0xff] %vm272_vm0, %v518_v11 }
  0x25   : > { %280 = vst.msk [vmem:[%s694_s19 + $0x30] sm:$0xff] %vm272_vm0, %v520_v16 }
  0x26   : > { %281 = vst.msk [vmem:[%s694_s19 + $0x38] sm:$0xff] %vm272_vm0, %v520_v16 }
  0x27   : > { %284 = vst.msk [vmem:[%s694_s19 + $0x50] sm:$0xff] %vm272_vm0, %v518_v11  ;;  %300 = vrot.lane.b32.xlu1 %v267_v20, %s605_s30 }
  0x28   : > { %279 = vst.msk [vmem:[%s694_s19 + $0x28] sm:$0x3] %vm275_vm1, %v514_v2 }
  0x29   : > { %296 = vrot.lane.b32.xlu0 %v265_v23, %s605_s30  ;;  %276 = vst.msk [vmem:[%s694_s19 + $0x10] sm:$0x3] %vm275_vm1, %v516_v6 }
  0x2a   : > { %282 = vst.msk [vmem:[%s694_s19 + $0x40] sm:$0x3] %vm275_vm1, %v520_v16 }
  0x2b   : > { %304 = vrot.lane.b32.xlu2 %v269_v29, %s605_s30  ;;  %285 = vst.msk [vmem:[%s694_s19 + $0x58] sm:$0x3] %vm275_vm1, %v518_v11 }
  0x2f   : > { %308 = vrot.lane.b32.xlu1 %v271_v30, %s605_s30 }
  0x31   : > { %306 = vrot.lane.b32.xlu0 %v270_v31, %s605_s30 }
  0x7d   : > { %v303_v32 = vpop.permute.xlu2 %302 }
  0x7e   : > { %323 = vst.msk [vmem:[%s694_s19 + $0x31] sm:$0xff] %vm318_vm2, %v303_v32 }
  0x85   : > { %v305_v33 = vpop.permute.xlu2 %304 }
  0x86   : > { %324 = vst.msk [vmem:[%s694_s19 + $0x39] sm:$0xff] %vm318_vm2, %v305_v33 }
  0x91   : > { %v299_v34 = vpop.permute.xlu1 %298 }
  0x92   : > { %321 = vst.msk [vmem:[%s694_s19 + $0x19] sm:$0xff] %vm318_vm2, %v299_v34 }
  0x93   : > { %v295_v35 = vpop.permute.xlu0 %294 }
  0x94   : > { %319 = vst.msk [vmem:[%s694_s19 + $0x1] sm:$0xff] %vm318_vm2, %v295_v35 }
  0x99   : > { %v301_v36 = vpop.permute.xlu1 %300 }
  0x9a   : > { %322 = vst.msk [vmem:[%s694_s19 + $0x21] sm:$0xff] %vm318_vm2, %v301_v36 }
  0x9b   : > { %v297_v37 = vpop.permute.xlu0 %296 }
  0x9c   : > { %320 = vst.msk [vmem:[%s694_s19 + $0x9] sm:$0xff] %vm318_vm2, %v297_v37 }
  0xa1   : > { %v309_v38 = vpop.permute.xlu1 %308 }
  0xa2   : > { %326 = vst.msk [vmem:[%s694_s19 + $0x51] sm:$0xff] %vm318_vm2, %v309_v38 }
  0xa3   : > { %v307_v39 = vpop.permute.xlu0 %306 }
  0xa4   : > { %325 = vst.msk [vmem:[%s694_s19 + $0x49] sm:$0xff] %vm318_vm2, %v307_v39 }
  0xa5 PF: > { %s15_s14 = sadd.s32 1, %s601_s14   ;;  %s786_s9 = smov %s585_s10 }
  0xa6   : > { %p12_p0 = scmp.ge.s32.totalorder %s15_s14, 4   ;;  %s787_s10 = smov %s589_s11 }
  0xa7   : > { %s788_s11 = smov %s670_s21  ;;  %s789_s12 = smov %s597_s13 }
  0xa8   : > { %s790_s13 = smov %s792_s16  ;;  %14 = sbr.rel (!%p12_p0) target bundleno = 4 (0x4), region = 71 }
  0xad   :  { %359 = vsyncpa [#allocation3], 1 }
  0xae   :  { %361 = vsyncpa [#allocation3 + $0x1], 1 }

</bundles_post_ra>
